<compile_context>
chip_gen: v5e
topology: v5e:2x2
jax: 0.10.0
libtpu: 0.0.40
codegen_flags: <defaults>
</compile_context>

<pallas_src>
import functools
import math

import jax
import jax.numpy as jnp
from jax.experimental import pallas as pl
from jax.experimental.pallas import tpu as pltpu  # noqa: F401  (TPU backend)

LANES = 128


def _round_up(x, m):
    return (x + m - 1) // m * m


def gcn_kernel(x_ref, a_ref, w_ref, o_ref, *, offs, H1, H2):
    """Single-invocation kernel: whole graph fits in one (8,128)-friendly tile."""
    Xs = x_ref.shape[1]

    X = x_ref[...]                                     # (N, Xs)  node features
    A = a_ref[...]                                     # (N, N)   normalized adjacency

    # Static, sublane-aligned slices into the packed weight slab.
    W1  = w_ref[offs["W1"]:offs["W1"] + Xs, :H1]       # (Xs, H1)
    b1  = w_ref[offs["b1"]:offs["b1"] + 1, :H1]        # (1, H1)
    W2  = w_ref[offs["W2"]:offs["W2"] + H1, :H2]       # (H1, H2)
    b2  = w_ref[offs["b2"]:offs["b2"] + 1, :H2]        # (1, H2)
    Wfc = w_ref[offs["Wfc"]:offs["Wfc"] + H2, :]       # (H2, 128) zero-padded past C
    bfc = w_ref[offs["bfc"]:offs["bfc"] + 1, :]        # (1, 128)  zero-padded past C

    # X @ W1 + b1  (general X; no identity assumption)
    h = jnp.dot(X, W1, preferred_element_type=jnp.float32) + b1
    # relu(A_hat @ h)
    h = jnp.maximum(jnp.dot(A, h, preferred_element_type=jnp.float32), 0.0)
    # h @ W2 + b2
    h = jnp.dot(h, W2, preferred_element_type=jnp.float32) + b2
    # A_hat @ h
    h = jnp.dot(A, h, preferred_element_type=jnp.float32)
    # log_softmax over the last (hidden, = H2) dim only — padded lanes never enter.
    m = jnp.max(h, axis=-1, keepdims=True)
    sh = h - m
    ls = sh - jnp.log(jnp.sum(jnp.exp(sh), axis=-1, keepdims=True))
    # fc1: lane-dense (N, 128) result; columns >= C are exactly zero.
    o_ref[...] = jnp.dot(ls, Wfc, preferred_element_type=jnp.float32) + bfc
    # TODO(synk): nn.Dropout is defined in __init__ but never used in forward,
    # so it is intentionally omitted (eval-mode forward).


def pack_weight_slab(W1, b1, W2, b2, Wfc_t, bfc):
    """Pack all weights into one lane-dense (R, 128) f32 slab — done ONCE at build time.

    Each block is row-aligned to a multiple of 8 sublanes and zero-padded to the
    full 128 lanes, then everything is a single concatenate (one fusion), not a
    chain of dynamic-update-slices.
    """
    sections = [("W1", W1), ("b1", b1), ("W2", W2),
                ("b2", b2), ("Wfc", Wfc_t), ("bfc", bfc)]
    offs, blocks, row = {}, [], 0
    for name, mat in sections:
        mat = jnp.asarray(mat, jnp.float32)
        r = _round_up(mat.shape[0], 8)
        blocks.append(jnp.pad(mat, ((0, r - mat.shape[0]), (0, LANES - mat.shape[1]))))
        offs[name] = row
        row += r
    return jnp.concatenate(blocks, axis=0), offs


def make_gcn_forward(W1, b1, W2, b2, Wfc_t, bfc):
    """Build the GCN forward once: weights are packed here, not per call."""
    H1 = W1.shape[1]
    H2 = W2.shape[1]
    C = Wfc_t.shape[1]
    slab, offs = pack_weight_slab(W1, b1, W2, b2, Wfc_t, bfc)
    kernel = functools.partial(gcn_kernel, offs=offs, H1=H1, H2=H2)

    @jax.jit
    def forward(X, A_hat):
        N, Xs = X.shape
        flops = (2 * N * Xs * H1 + 2 * N * N * H1 + 2 * N * H1 * H2
                 + 2 * N * N * H2 + 2 * N * H2 * LANES)
        transcendentals = N * H2 + N                       # exp + log in log_softmax
        bytes_accessed = (X.size + A_hat.size + slab.size + N * LANES) * 4

        out_padded = pl.pallas_call(
            kernel,
            out_shape=jax.ShapeDtypeStruct((N, LANES), jnp.float32),
            grid=(),
            in_specs=[
                pl.BlockSpec(X.shape, lambda: (0, 0)),      # per-call node features
                pl.BlockSpec(A_hat.shape, lambda: (0, 0)),  # per-call adjacency
                pl.BlockSpec(slab.shape, lambda: (0, 0)),   # static weight slab
            ],
            out_specs=pl.BlockSpec((N, LANES), lambda: (0, 0)),
            cost_estimate=pl.CostEstimate(
                flops=flops,
                transcendentals=transcendentals,
                bytes_accessed=bytes_accessed,
            ),
        )(X, A_hat, slab)
        # Keep the module's (N, C) output contract; the slice fuses inside this jit.
        return out_padded[:, :C]

    return forward


def reference_forward(X, A_hat, W1, b1, W2, b2, Wfc_t, bfc):
    h = X @ W1 + b1
    h = jnp.maximum(A_hat @ h, 0.0)
    h = h @ W2 + b2
    h = A_hat @ h
    h = jax.nn.log_softmax(h, axis=-1)
    return h @ Wfc_t + bfc


if __name__ == "__main__":
    # Small, TPU-friendly sizes consistent with the module's forward.
    N = 8                      # number of graph nodes
    X_size = 8                 # input feature size (identity matrix -> N == X_size)
    hidden_layer_1_size = 32
    hidden_layer_2_size = 16
    no_output_classes = 4

    key = jax.random.PRNGKey(0)
    k_a, k_w1, k_b1, k_w2, k_b2, k_wfc, k_bfc, k_x = jax.random.split(key, 8)

    # Input: identity matrix, as used by this GCN.
    X = jnp.eye(N, X_size, dtype=jnp.float32)

    # Normalized symmetric adjacency matrix (built deterministically in-script).
    A = jax.random.uniform(k_a, (N, N), dtype=jnp.float32)
    A = (A + A.T) * 0.5 + jnp.eye(N, dtype=jnp.float32)       # symmetric + self loops
    d = jnp.sum(A, axis=1)
    d_inv_sqrt = 1.0 / jnp.sqrt(d)
    A_hat = A * d_inv_sqrt[:, None] * d_inv_sqrt[None, :]

    # Parameter init mirroring the PyTorch module's init distributions.
    var1 = 1.0 / math.sqrt(hidden_layer_1_size)
    var2 = 1.0 / math.sqrt(hidden_layer_2_size)
    W1 = jax.random.uniform(k_w1, (X_size, hidden_layer_1_size),
                            dtype=jnp.float32, minval=-var1, maxval=var1)
    b1 = var1 * jax.random.normal(k_b1, (1, hidden_layer_1_size), dtype=jnp.float32)
    W2 = jax.random.uniform(k_w2, (hidden_layer_1_size, hidden_layer_2_size),
                            dtype=jnp.float32, minval=-var2, maxval=var2)
    b2 = var2 * jax.random.normal(k_b2, (1, hidden_layer_2_size), dtype=jnp.float32)
    # fc1: nn.Linear(hidden_layer_2_size, no_output_classes)
    bound = 1.0 / math.sqrt(hidden_layer_2_size)
    Wfc = jax.random.uniform(k_wfc, (no_output_classes, hidden_layer_2_size),
                             dtype=jnp.float32, minval=-bound, maxval=bound)
    bfc = jax.random.uniform(k_bfc, (1, no_output_classes),
                             dtype=jnp.float32, minval=-bound, maxval=bound)
    Wfc_t = Wfc.T  # (H2, C)

    # Weight packing happens once here, outside the per-call path.
    gcn_forward = make_gcn_forward(W1, b1, W2, b2, Wfc_t, bfc)

    out = gcn_forward(X, A_hat)
    out = jax.block_until_ready(out)

    ref = reference_forward(X, A_hat, W1, b1, W2, b2, Wfc_t, bfc)
    assert out.shape == (N, no_output_classes)
    assert jnp.allclose(out, ref, atol=1e-5, rtol=1e-5)

    # General-X path (no identity assumption baked in): sanity-check it too.
    X_rand = jax.random.normal(k_x, (N, X_size), dtype=jnp.float32)
    out2 = jax.block_until_ready(gcn_forward(X_rand, A_hat))
    ref2 = reference_forward(X_rand, A_hat, W1, b1, W2, b2, Wfc_t, bfc)
    assert jnp.allclose(out2, ref2, atol=1e-5, rtol=1e-5)

    print("KERNEL_OK")
</pallas_src>

<mosaic_0001>
module attributes {stable_mosaic.version = 11 : i64} {
  func.func @gcn_kernel(%arg0: memref<8x8xf32, #tpu.memory_space<vmem>>, %arg1: memref<8x8xf32, #tpu.memory_space<vmem>>, %arg2: memref<80x128xf32, #tpu.memory_space<vmem>>, %arg3: memref<8x128xf32, #tpu.memory_space<vmem>>) attributes {dimension_semantics = [], scalar_prefetch = 0 : i64, scratch_operands = 0 : i64, tpu.core_type = #tpu.core_type<tc>} {
    %c0 = arith.constant 0 : index
    %c0_0 = arith.constant 0 : index
    %0 = vector.load %arg0[%c0, %c0_0] : memref<8x8xf32, #tpu.memory_space<vmem>>, vector<8x8xf32>
    %c0_1 = arith.constant 0 : index
    %c0_2 = arith.constant 0 : index
    %1 = vector.load %arg1[%c0_1, %c0_2] : memref<8x8xf32, #tpu.memory_space<vmem>>, vector<8x8xf32>
    %c0_3 = arith.constant 0 : index
    %c0_4 = arith.constant 0 : index
    %2 = vector.load %arg2[%c0_3, %c0_4] : memref<80x128xf32, #tpu.memory_space<vmem>>, vector<8x32xf32>
    %c8 = arith.constant 8 : index
    %c0_5 = arith.constant 0 : index
    %3 = vector.load %arg2[%c8, %c0_5] : memref<80x128xf32, #tpu.memory_space<vmem>>, vector<1x32xf32>
    %c16 = arith.constant 16 : index
    %c0_6 = arith.constant 0 : index
    %4 = vector.load %arg2[%c16, %c0_6] : memref<80x128xf32, #tpu.memory_space<vmem>>, vector<32x16xf32>
    %c48 = arith.constant 48 : index
    %c0_7 = arith.constant 0 : index
    %5 = vector.load %arg2[%c48, %c0_7] : memref<80x128xf32, #tpu.memory_space<vmem>>, vector<1x16xf32>
    %c56 = arith.constant 56 : index
    %c0_8 = arith.constant 0 : index
    %6 = vector.load %arg2[%c56, %c0_8] : memref<80x128xf32, #tpu.memory_space<vmem>>, vector<16x128xf32>
    %c72 = arith.constant 72 : index
    %c0_9 = arith.constant 0 : index
    %7 = vector.load %arg2[%c72, %c0_9] : memref<80x128xf32, #tpu.memory_space<vmem>>, vector<1x128xf32>
    %cst = arith.constant dense<0.000000e+00> : vector<8x32xf32>
    %8 = tpu.matmul %0, %2, %cst {dimension_numbers = #tpu.dot_dimension_numbers<[1], [0], [0], [1], [0, 0, 1, 1], [], []>} : vector<8x8xf32>, vector<8x32xf32>, vector<8x32xf32> -> vector<8x32xf32>
    %9 = vector.broadcast %3 : vector<1x32xf32> to vector<8x32xf32>
    %10 = arith.addf %8, %9 : vector<8x32xf32>
    %cst_10 = arith.constant dense<0.000000e+00> : vector<8x32xf32>
    %11 = tpu.matmul %1, %10, %cst_10 {dimension_numbers = #tpu.dot_dimension_numbers<[1], [0], [0], [1], [0, 0, 1, 1], [], []>} : vector<8x8xf32>, vector<8x32xf32>, vector<8x32xf32> -> vector<8x32xf32>
    %cst_11 = arith.constant 0.000000e+00 : f32
    %12 = vector.broadcast %cst_11 : f32 to vector<8x32xf32>
    %13 = arith.maximumf %11, %12 : vector<8x32xf32>
    %cst_12 = arith.constant dense<0.000000e+00> : vector<8x16xf32>
    %14 = tpu.matmul %13, %4, %cst_12 {dimension_numbers = #tpu.dot_dimension_numbers<[1], [0], [0], [1], [0, 0, 1, 1], [], []>} : vector<8x32xf32>, vector<32x16xf32>, vector<8x16xf32> -> vector<8x16xf32>
    %15 = vector.broadcast %5 : vector<1x16xf32> to vector<8x16xf32>
    %16 = arith.addf %14, %15 : vector<8x16xf32>
    %cst_13 = arith.constant dense<0.000000e+00> : vector<8x16xf32>
    %17 = tpu.matmul %1, %16, %cst_13 {dimension_numbers = #tpu.dot_dimension_numbers<[1], [0], [0], [1], [0, 0, 1, 1], [], []>} : vector<8x8xf32>, vector<8x16xf32>, vector<8x16xf32> -> vector<8x16xf32>
    %cst_14 = arith.constant dense<0xFF800000> : vector<8xf32>
    %18 = vector.multi_reduction <maximumf>, %17, %cst_14 [1] : vector<8x16xf32> to vector<8xf32>
    %19 = vector.shape_cast %18 : vector<8xf32> to vector<8x1xf32>
    %20 = vector.broadcast %19 : vector<8x1xf32> to vector<8x16xf32>
    %21 = arith.subf %17, %20 : vector<8x16xf32>
    %22 = math.exp %21 : vector<8x16xf32>
    %cst_15 = arith.constant dense<0.000000e+00> : vector<8xf32>
    %23 = vector.multi_reduction <add>, %22, %cst_15 [1] : vector<8x16xf32> to vector<8xf32>
    %24 = vector.shape_cast %23 : vector<8xf32> to vector<8x1xf32>
    %25 = math.log %24 : vector<8x1xf32>
    %26 = vector.broadcast %25 : vector<8x1xf32> to vector<8x16xf32>
    %27 = arith.subf %21, %26 : vector<8x16xf32>
    %cst_16 = arith.constant dense<0.000000e+00> : vector<8x128xf32>
    %28 = tpu.matmul %27, %6, %cst_16 {dimension_numbers = #tpu.dot_dimension_numbers<[1], [0], [0], [1], [0, 0, 1, 1], [], []>} : vector<8x16xf32>, vector<16x128xf32>, vector<8x128xf32> -> vector<8x128xf32>
    %29 = vector.broadcast %7 : vector<1x128xf32> to vector<8x128xf32>
    %30 = arith.addf %28, %29 : vector<8x128xf32>
    %c0_17 = arith.constant 0 : index
    %c0_18 = arith.constant 0 : index
    %31 = vector.load %arg3[%c0_17, %c0_18] : memref<8x128xf32, #tpu.memory_space<vmem>>, vector<8x128xf32>
    tpu.vector_store %arg3[%c0_17, %c0_18], %30 {strides = array<i32>} : memref<8x128xf32, #tpu.memory_space<vmem>>, vector<8x128xf32>,
    return
  }
}

</mosaic_0001>

<bundles_post_ra>
// kernel: forward.1
= control target key start
LH: loop header
LB: loop body
LE: loop exit
PB: predicated region body
PF: predicated region fallthrough
CT: control target
= control target key end

     0   :  { %8 = vsyncpa [#allocation3], 0  ;;  %s343_s0 = inlined_call_operand.hbm [shape: f32[8,8], index: 0, kind: input, shape index: {}]   ;;  %s344_s1 = inlined_call_operand.hbm [shape: f32[8,8], index: 1, kind: input, shape index: {}]   ;;  %s345_s2 = inlined_call_operand.hbm [shape: f32[80,128], index: 2, kind: input, shape index: {}]   ;;  %s346_s3 = inlined_call_operand.vmem [shape: f32[8,128], index: 3, kind: output, shape index: {}]  }
   0x1   :  { %9 = vsyncpa [#allocation5], 0  ;;  %s26_s14 = sshll.u32 %s344_s1, 4  ;;  %s300_s15 = smov [#allocation4]   ;;  %s27_s14 = int_to_ptr.hbm [resolvable:$true] %s26_s14 }
   0x2   :  { %s28_s16 = sshll.u32 %s300_s15, 4  ;;  %s15_s19 = sshll.u32 %s343_s0, 4  ;;  %s29_s16 = int_to_ptr.vmem [resolvable:$true] %s28_s16  ;;  %s16_s19 = int_to_ptr.hbm [resolvable:$true] %s15_s19 }
   0x3   :  { %31 = dma.hbm_to_vmem [thread:$0]  %s27_s14, 128, %s29_s16, [#allocation5]  }
   0x4   :  { %s301_s20 = smov [#allocation2]   ;;  %s36_s24 = sshll.u32 %s345_s2, 4  ;;  %s37_s24 = int_to_ptr.hbm [resolvable:$true] %s36_s24 }
   0x5   :  { %s17_s21 = sshll.u32 %s301_s20, 4  ;;  %s302_s1 = smov [#allocation6]   ;;  %s18_s21 = int_to_ptr.vmem [resolvable:$true] %s17_s21 }
   0x6   :  { %20 = dma.hbm_to_vmem [thread:$0]  %s16_s19, 128, %s18_s21, [#allocation3]  }
   0x7   :  { %s38_s25 = sshll.u32 %s302_s1, 4  ;;  %s303_s26 = smov 128   ;;  %s39_s25 = int_to_ptr.vmem [resolvable:$true] %s38_s25 }
   0x8   :  { %s304_s27 = smov 8  }
   0x9   :  { %44 = dma.hbm_to_vmem [thread:$0]  %s37_s24, 1280, %s39_s25, [#allocation5], %s303_s26, %s303_s26, %s304_s27  }
   0xa   :  { %296 = dma.done.wait [#allocation3], 128  }
   0xb   :  { %297 = vsyncadd [#allocation3], 4294967168 }
   0xc   :  { %298 = dma.done.wait [#allocation5], 1408  }
   0xd   :  { %299 = vsyncadd [#allocation5], 4294965888  ;;  %vm70_vm0 = vcmask 64512   ;;  %v59_v0 = vld [vmem:[#allocation6] sm:$0xff]  ;;  %v57_v1 = vld [vmem:[#allocation2] sm:$0xff]  ;;  %vm119_vm1 = vcmask 261120  }
   0xe   :  { %89 = vmatpush.msra.mxu0 %v59_v0  ;;  %v64_v2 = vld [vmem:[#allocation6 + $0x28] sm:$0xff]  ;;  %v63_v3 = vld [vmem:[#allocation6 + $0x20] sm:$0xff]  ;;  %v58_v7 = vld [vmem:[#allocation4] sm:$0xff]  ;;  %vm163_vm2 = vcmask 130048  }
   0xf   :  { %207 = vmatmul.msk.f32.vlgmr.msra.gmra.mxu0 %vm70_vm0, %v57_v1  ;;  %135 = vmatpush.msra.mxu2 %v64_v2  ;;  %v217_v4 = vld [vmem:[#allocation6 + $0x8] ss:$0 sm:$0xff]  ;;  %v62_v8 = vld [vmem:[#allocation6 + $0x18] sm:$0xff]  ;;  %v61_v9 = vld [vmem:[#allocation6 + $0x10] sm:$0xff] }
  0x10   :  { %v218_v12 = vld [vmem:[#allocation6 + $0x30] ss:$0 sm:$0xff]  ;;  %v67_v22 = vld [vmem:[#allocation6 + $0x40] sm:$0xff]  ;;  %v66_v23 = vld [vmem:[#allocation6 + $0x38] sm:$0xff] }
  0x11   :  { %136 = vmatpush.msra.mxu2 %v63_v3  ;;  %194 = vmatpush.msrb.mxu0 %v67_v22  ;;  %v219_v28 = vld [vmem:[#allocation6 + $0x48] ss:$0 sm:$0xff] }
  0x13   :  { %137 = vmatpush.msra.mxu2 %v62_v8  ;;  %195 = vmatpush.msrb.mxu0 %v66_v23 }
  0x15   :  { %138 = vmatpush.msra.mxu2 %v61_v9 }
  0x8c   :  { %v91_v5 = vpop.f32.mrf.mxu0 }
  0x8d   :  { %v92_v6 = vadd.f32 %v217_v4, %v91_v5 }
  0x8f   :  { %112 = vmatpush.msra.mxu1 %v92_v6 }
  0x90   :  { %208 = vmatmul.msk.f32.vlgmr.msra.gmra.mxu1 %vm70_vm0, %v58_v7 }
 0x10d   :  { %v114_v10 = vpop.f32.mrf.mxu1 }
 0x10e   :  { %v117_v11 = vmax.f32 %v114_v10, 0.0 }
 0x110   :  { %209 = vmatmul.msk.f32.vlgmr.msra.gmra.mxu2 %vm119_vm1, %v117_v11 }
 0x193   :  { %v140_v13 = vpop.f32.mrf.mxu2 }
 0x194   :  { %v141_v14 = vadd.f32 %v218_v12, %v140_v13 }
 0x196   :  { %158 = vmatpush.msra.mxu3 %v141_v14 }
 0x197   :  { %210 = vmatmul.msk.f32.vlgmr.msra.gmra.mxu3 %vm70_vm0, %v58_v7 }
 0x21a   :  { %v160_v15 = vpop.f32.mrf.mxu3 }
 0x21b   :  { %v164_v16 = vsel %vm163_vm2, %v160_v15, -inf }
 0x21c   :  { %165 = vmax.xlane.f32.xlu0 %v164_v16 }
 0x28f   :  { %v166_v17 = vpop.xlane.xlu0 %165 }
 0x290   :  { %v167_v18 = vsub.f32 %v160_v15, %v166_v17 }
 0x292   :  { %v168_v19 = vmul.f32 1.442695, %v167_v18 }
 0x294   :  { %220 = vpow2.f32 %v168_v19 }
 0x29a   :  { %v221_v20 = vpop.eup %220 }
 0x29b   :  { %v170_v21 = vsel %vm163_vm2, %v221_v20, 0.0 }
 0x29c   :  { %171 = vadd.xlane.f32.xlu0 %v170_v21 }
 0x30f   :  { %v172_v24 = vpop.xlane.xlu0 %171 }
 0x310   :  { %222 = vlog2.f32 %v172_v24 }
 0x316   :  { %v223_v25 = vpop.eup %222 }
 0x317   :  { %v174_v26 = vmul.f32 0.6931472, %v223_v25 }
 0x319   :  { %v175_v27 = vsub.f32 %v167_v18, %v174_v26 }
 0x31b   :  { %211 = vmatmul.msk.f32.vlgmr.msrb.gmra.mxu0 %vm163_vm2, %v175_v27 }
 0x398   :  { %v197_v29 = vpop.f32.mrf.mxu0 }
 0x399   :  { %v198_v30 = vadd.f32 %v219_v28, %v197_v29 }
 0x39b   :  { %200 = vst [vmem:[%s346_s3] sm:$0xff] %v198_v30 }
 0x39c   :  { %205 = vsyncpa [#allocation3], 1 }
 0x39d   :  { %206 = vsyncpa [#allocation5], 1 }

</bundles_post_ra>
